<compile_context>
chip_gen: v7x
topology: tpu7x:2x2x1
jax: 0.10.0
libtpu: 0.0.40
codegen_flags: <defaults>
</compile_context>

<pallas_src>
import functools

import jax
import jax.numpy as jnp
from jax.experimental import pallas as pl
from jax.experimental.pallas import tpu as pltpu


def _round_up(x, m):
    return ((x + m - 1) // m) * m


def _cdiv(a, b):
    return -(-a // b)


# ---------------------------------------------------------------------------
# Kernel: one row tile of one node type.  Single fused-K MXU matmul with f32
# accumulation, f32 bias add, cast to the output dtype.
# ---------------------------------------------------------------------------
def _het_update_kernel(tile_type_ref, x_ref, w_ref, b_ref, out_ref):
    del tile_type_ref  # consumed by the index_maps only
    acc = jnp.dot(x_ref[...], w_ref[...], preferred_element_type=jnp.float32)
    out_ref[...] = (acc + b_ref[...]).astype(out_ref.dtype)


def _choose_row_tile(max_nr, c_eff, in_itemsize, out_itemsize,
                     vmem_budget_bytes=28 * 1024 * 1024, ceiling=8192):
    """Largest row tile (in reshaped rows) whose double-buffered footprint fits
    the budget; start at 8192 per review, then clamp to the data size."""
    resident = 2 * (2 * c_eff * c_eff * in_itemsize) + 2 * (c_eff * 4)
    tm = ceiling
    while tm > 128:
        per_step = (2 * (tm * 2 * c_eff * in_itemsize)   # fused [cur|past], 2 bufs
                    + 2 * (tm * c_eff * out_itemsize))   # out, 2 bufs
        if per_step + resident <= vmem_budget_bytes:
            break
        tm //= 2
    tm = max(tm, 128)
    # Don't make tiles (and therefore per-type padding) larger than the data.
    return max(8, min(tm, _round_up(max(max_nr, 1), 8)))


# ---------------------------------------------------------------------------
# One-time parameter preparation (hoisted out of the per-forward path).
# ---------------------------------------------------------------------------
def prepare_het_update_params(params, node_types, compute_dtype=jnp.bfloat16):
    """For each node type, split the PyTorch-layout (C, 2C) weight into its
    `current` / `past` halves, transpose for x @ W, lift to a lane-dense
    effective width (block-diagonal replication when 128 % C == 0, zero-pad
    otherwise), stack the two halves along K, and stack over node types."""
    meta = []
    c_effs = set()
    for nt in node_types:
        w, b = params[nt]
        c = w.shape[0]
        assert w.shape == (c, 2 * c) and b.shape == (c,)
        if c % 128 == 0:
            r, c_eff = 1, c
        elif 128 % c == 0:
            r, c_eff = 128 // c, 128          # block-diagonal trick (no zero HBM)
        else:
            r, c_eff = 1, _round_up(c, 128)    # awkward C: pad channels
        meta.append((nt, r, c))
        c_effs.add(c_eff)
    # TODO(synk): support node types whose effective lane widths differ (would
    # need per-width weight stacks); standard usage shares one in_channels.
    assert len(c_effs) == 1, "all node types must share one effective width"
    c_eff = c_effs.pop()

    w_list, b_list = [], []
    for (nt, r, c) in meta:
        w, b = params[nt]
        w_cur = w[:, :c].T.astype(jnp.float32)    # (C, C), for x @ W
        w_past = w[:, c:].T.astype(jnp.float32)
        if r > 1:
            eye = jnp.eye(r, dtype=jnp.float32)
            wc = jnp.kron(eye, w_cur)              # (c_eff, c_eff) block-diagonal
            wp = jnp.kron(eye, w_past)
            bt = jnp.tile(b.astype(jnp.float32), r)[None, :]
        else:
            pad = c_eff - c
            wc = jnp.pad(w_cur, ((0, pad), (0, pad)))
            wp = jnp.pad(w_past, ((0, pad), (0, pad)))
            bt = jnp.pad(b.astype(jnp.float32), (0, pad))[None, :]
        w_list.append(jnp.concatenate([wc, wp], axis=0).astype(compute_dtype))
        b_list.append(bt)
    w_stack = jnp.stack(w_list)    # (T, 2*c_eff, c_eff)
    b_stack = jnp.stack(b_list)    # (T, 1, c_eff), f32
    return (w_stack, b_stack, tuple(meta)), c_eff


# ---------------------------------------------------------------------------
# Whole forward under one jit: cast/pad/reshape/concat fuse into a single
# pre-pass, then one fused pallas_call over a 1-D grouped row-tile grid.
# ---------------------------------------------------------------------------
@functools.partial(jax.jit,
                   static_argnames=("meta", "compute_dtype", "out_dtype"))
def _forward(cur_dict, past_dict, w_stack, b_stack, *,
             meta, compute_dtype, out_dtype):
    c_eff = w_stack.shape[-1]
    in_isz = jnp.dtype(compute_dtype).itemsize
    out_isz = jnp.dtype(out_dtype).itemsize

    nrs = [_cdiv(cur_dict[nt].shape[0], r) for (nt, r, _c) in meta]
    tm = _choose_row_tile(max(nrs), c_eff, in_isz, out_isz)

    fused_parts, tile_types, offsets = [], [], []
    row_off = 0
    for t, (nt, r, c) in enumerate(meta):
        x, p = cur_dict[nt], past_dict[nt]
        n = x.shape[0]
        n_r = _cdiv(n, r)
        n_r_pad = _round_up(max(n_r, 1), tm)   # pad only to this type's tiles
        rows_pad = n_r_pad * r
        cpad = c_eff // r - c

        def _prep(a):
            a = a.astype(compute_dtype)
            a = jnp.pad(a, ((0, rows_pad - n), (0, cpad)))
            return a.reshape(n_r_pad, c_eff)   # lane-dense, free for cpad == 0

        fused_parts.append(jnp.concatenate([_prep(x), _prep(p)], axis=1))
        tile_types += [t] * (n_r_pad // tm)
        offsets.append(row_off)
        row_off += n_r_pad

    x_all = jnp.concatenate(fused_parts, axis=0)          # (total, 2*c_eff)
    tile_type = jnp.array(tile_types, dtype=jnp.int32)    # per-tile node-type id
    num_tiles = len(tile_types)
    total_rows = row_off

    out_all = pl.pallas_call(
        _het_update_kernel,
        out_shape=jax.ShapeDtypeStruct((total_rows, c_eff), out_dtype),
        grid_spec=pltpu.PrefetchScalarGridSpec(
            num_scalar_prefetch=1,
            grid=(num_tiles,),
            in_specs=[
                # fused [cur | past] row tile
                pl.BlockSpec((tm, 2 * c_eff), lambda i, tt: (i, 0)),
                # per-type stacked weights/bias: constant across a type's tiles,
                # so they stay VMEM-resident while row tiles stream through.
                pl.BlockSpec((None, 2 * c_eff, c_eff),
                             lambda i, tt: (tt[i], 0, 0)),
                pl.BlockSpec((None, 1, c_eff), lambda i, tt: (tt[i], 0, 0)),
            ],
            out_specs=pl.BlockSpec((tm, c_eff), lambda i, tt: (i, 0)),
        ),
        compiler_params=pltpu.CompilerParams(
            dimension_semantics=("parallel",),   # megacore splits the row axis
            vmem_limit_bytes=48 * 1024 * 1024,
        ),
    )(tile_type, x_all, w_stack, b_stack)

    out_dict = {}
    for t, (nt, r, c) in enumerate(meta):
        n = cur_dict[nt].shape[0]
        n_r = _cdiv(n, r)
        blk = out_all[offsets[t]: offsets[t] + n_r]            # (n_r, c_eff)
        out_dict[nt] = blk.reshape(n_r * r, c_eff // r)[:n, :c]
    return out_dict


def het_node_update_mlp(current_in_dict, past_in_dict, prepared_params,
                        node_types, compute_dtype=jnp.bfloat16,
                        out_dtype=jnp.float32):
    """Dict-in / dict-out forward mirroring HetNodeUpdateMLP.forward."""
    w_stack, b_stack, meta = prepared_params
    assert tuple(node_types) == tuple(m[0] for m in meta)
    return _forward(current_in_dict, past_in_dict, w_stack, b_stack,
                    meta=meta, compute_dtype=compute_dtype, out_dtype=out_dtype)


def _init_linear_params(key, in_features, out_features):
    """Deterministic init mimicking PyTorch nn.Linear defaults."""
    kw, kb = jax.random.split(key)
    bound = 1.0 / jnp.sqrt(in_features)
    weight = jax.random.uniform(
        kw, (out_features, in_features), jnp.float32, -bound, bound)
    bias = jax.random.uniform(kb, (out_features,), jnp.float32, -bound, bound)
    return weight, bias


if __name__ == "__main__":
    # metadata[0] = node types of the heterogeneous graph
    node_types = ("author", "paper")
    in_channels = 32                      # per-node-type feature dim C
    num_nodes = {"author": 16, "paper": 8}

    key = jax.random.PRNGKey(0)
    keys = jax.random.split(key, 3 * len(node_types))

    params = {}
    current_in_dict = {}
    past_in_dict = {}
    for i, nt in enumerate(node_types):
        k_cur, k_past, k_lin = keys[3 * i], keys[3 * i + 1], keys[3 * i + 2]
        current_in_dict[nt] = jax.random.normal(
            k_cur, (num_nodes[nt], in_channels), jnp.float32)
        past_in_dict[nt] = jax.random.normal(
            k_past, (num_nodes[nt], in_channels), jnp.float32)
        # Linear(in_channels * 2, in_channels) -> weight (C, 2C), bias (C,)
        params[nt] = _init_linear_params(k_lin, 2 * in_channels, in_channels)

    # Plain-JAX reference: concat-then-Linear, identical math to the module.
    ref = {}
    for nt in node_types:
        w, b = params[nt]
        cat = jnp.concatenate([current_in_dict[nt], past_in_dict[nt]], axis=1)
        ref[nt] = cat @ w.T + b

    ok = True

    # 1) f32 compute path: tight tolerance.
    prep_f32, _ = prepare_het_update_params(params, node_types, jnp.float32)
    out_f32 = het_node_update_mlp(current_in_dict, past_in_dict, prep_f32,
                                  node_types, compute_dtype=jnp.float32,
                                  out_dtype=jnp.float32)
    for nt in node_types:
        jax.block_until_ready(out_f32[nt])
        ok &= out_f32[nt].shape == ref[nt].shape
        ok &= bool(jnp.allclose(out_f32[nt], ref[nt], atol=1e-5, rtol=1e-5))

    # 2) bf16 compute path (production config: halves streamed HBM bytes,
    #    f32 accumulation; intentional accuracy trade-off).
    prep_bf16, _ = prepare_het_update_params(params, node_types, jnp.bfloat16)
    out_bf16 = het_node_update_mlp(current_in_dict, past_in_dict, prep_bf16,
                                   node_types, compute_dtype=jnp.bfloat16,
                                   out_dtype=jnp.float32)
    for nt in node_types:
        jax.block_until_ready(out_bf16[nt])
        ok &= bool(jnp.allclose(out_bf16[nt], ref[nt], atol=5e-2, rtol=5e-2))

    assert ok, "mismatch vs concat-then-Linear reference"
    print("KERNEL_OK")
</pallas_src>

<mosaic_0001>
module attributes {stable_mosaic.version = 11 : i64} {
  func.func @_het_update_kernel(%arg0: i32, %arg1: memref<2xi32, #tpu.memory_space<smem>>, %arg2: memref<8x256xf32, #tpu.memory_space<vmem>>, %arg3: memref<1x256x128xf32, #tpu.memory_space<vmem>>, %arg4: memref<1x1x128xf32, #tpu.memory_space<vmem>>, %arg5: memref<8x128xf32, #tpu.memory_space<vmem>>) attributes {dimension_semantics = [#tpu.dimension_semantics<parallel>], iteration_bounds = array<i64: 2>, scalar_prefetch = 1 : i64, scratch_operands = 0 : i64, tpu.core_type = #tpu.core_type<tc>, window_params = [{transform_indices = @transform_0, window_bounds = array<i64: 8, 256>}, {transform_indices = @transform_1, window_bounds = array<i64: 1, 256, 128>}, {transform_indices = @transform_2, window_bounds = array<i64: 1, 1, 128>}, {transform_indices = @transform_3, window_bounds = array<i64: 8, 128>}]} {
    %c0 = arith.constant 0 : index
    %c0_0 = arith.constant 0 : index
    %0 = vector.load %arg2[%c0, %c0_0] : memref<8x256xf32, #tpu.memory_space<vmem>>, vector<8x256xf32>
    %c0_1 = arith.constant 0 : index
    %c0_2 = arith.constant 0 : index
    %c0_3 = arith.constant 0 : index
    %1 = vector.load %arg3[%c0_1, %c0_2, %c0_3] : memref<1x256x128xf32, #tpu.memory_space<vmem>>, vector<1x256x128xf32>
    %2 = vector.shape_cast %1 : vector<1x256x128xf32> to vector<256x128xf32>
    %cst = arith.constant dense<0.000000e+00> : vector<8x128xf32>
    %3 = tpu.matmul %0, %2, %cst {dimension_numbers = #tpu.dot_dimension_numbers<[1], [0], [0], [1], [0, 0, 1, 1], [], []>} : vector<8x256xf32>, vector<256x128xf32>, vector<8x128xf32> -> vector<8x128xf32>
    %c0_4 = arith.constant 0 : index
    %c0_5 = arith.constant 0 : index
    %c0_6 = arith.constant 0 : index
    %4 = vector.load %arg4[%c0_4, %c0_5, %c0_6] : memref<1x1x128xf32, #tpu.memory_space<vmem>>, vector<1x1x128xf32>
    %5 = vector.shape_cast %4 : vector<1x1x128xf32> to vector<1x128xf32>
    %6 = vector.broadcast %5 : vector<1x128xf32> to vector<8x128xf32>
    %7 = arith.addf %3, %6 : vector<8x128xf32>
    %c0_7 = arith.constant 0 : index
    %c0_8 = arith.constant 0 : index
    %8 = vector.load %arg5[%c0_7, %c0_8] : memref<8x128xf32, #tpu.memory_space<vmem>>, vector<8x128xf32>
    tpu.vector_store %arg5[%c0_7, %c0_8], %7 {strides = array<i32>} : memref<8x128xf32, #tpu.memory_space<vmem>>, vector<8x128xf32>,
    return
  }
  func.func @transform_0(%arg0: i32, %arg1: memref<2xi32, #tpu.memory_space<smem>>) -> (i32, i32) {
    %c0_i32 = arith.constant 0 : i32
    %c0_i32_0 = arith.constant 0 : i32
    return %arg0, %c0_i32 : i32, i32
  }
  func.func @transform_1(%arg0: i32, %arg1: memref<2xi32, #tpu.memory_space<smem>>) -> (i32, i32, i32) {
    %0 = arith.index_cast %arg0 : i32 to index
    %1 = memref.load %arg1[%0] : memref<2xi32, #tpu.memory_space<smem>>
    %c0_i32 = arith.constant 0 : i32
    %c0_i32_0 = arith.constant 0 : i32
    %c0_i32_1 = arith.constant 0 : i32
    return %1, %c0_i32, %c0_i32_0 : i32, i32, i32
  }
  func.func @transform_2(%arg0: i32, %arg1: memref<2xi32, #tpu.memory_space<smem>>) -> (i32, i32, i32) {
    %0 = arith.index_cast %arg0 : i32 to index
    %1 = memref.load %arg1[%0] : memref<2xi32, #tpu.memory_space<smem>>
    %c0_i32 = arith.constant 0 : i32
    %c0_i32_0 = arith.constant 0 : i32
    %c0_i32_1 = arith.constant 0 : i32
    return %1, %c0_i32, %c0_i32_0 : i32, i32, i32
  }
  func.func @transform_3(%arg0: i32, %arg1: memref<2xi32, #tpu.memory_space<smem>>) -> (i32, i32) {
    %c0_i32 = arith.constant 0 : i32
    %c0_i32_0 = arith.constant 0 : i32
    return %arg0, %c0_i32 : i32, i32
  }
}

</mosaic_0001>

<bundles_post_ra>
// kernel: _forward.1
= control target key start
LH: loop header
LB: loop body
LE: loop exit
PB: predicated region body
PF: predicated region fallthrough
CT: control target
= control target key end

     0   :  { %s831_s0 = inlined_call_operand.vmem [shape: s32[2], index: 0, kind: input, shape index: {}]   ;;  %s832_s1 = inlined_call_operand.vmem [shape: f32[16,256], index: 1, kind: input, shape index: {}]   ;;  %s833_s2 = inlined_call_operand.hbm [shape: f32[2,256,128], index: 2, kind: input, shape index: {}]   ;;  %s834_s3 = inlined_call_operand.vmem [shape: f32[2,1,128], index: 3, kind: input, shape index: {}]   ;;  %s835_s4 = inlined_call_operand.vmem [shape: f32[16,128], index: 4, kind: output, shape index: {}]  }
   0x1   :  { %s9_s17 = sshll.u32 %s831_s0, 4  ;;  %s10_s17 = int_to_ptr.vmem [resolvable:$true] %s9_s17 }
   0x2   :  { %s568_s18 = scalar_lea.vmem %s10_s17, 16  ;;  %p573_p1 = scmp.lt.s32.totalorder %s10_s17, %s10_s17 }
   0x3   :  { %p569_p0 = scmp.ne.s32.totalorder %s10_s17, %s568_s18  ;;  %p574_p2 = scmp.lt.s32.totalorder %s568_s18, %s568_s18 }
   0x5   :  { %p575_p3 = por %p574_p2, %p573_p1 }
   0x7   :  { %p576_p4 = pnand %p575_p3, %p569_p0 }
   0x9   :  { %579 = shalt.err (!%p576_p4)  }
   0xa   :  { %s648_s19 = smov [#allocation3]  }
   0xb   :  { %12 = dma.vmem_to_smem %s10_s17, 16, %s648_s19, [#allocation2] }
   0xc   :  { %626 = dma.done.wait [#allocation2], 16 }
   0xd   :  { %627 = vsyncadd [#allocation2], 4294967280 }
   0xe   :  { %14 = sfence }
   0xf   :  { %15 = vsyncpa [#allocation5], 0 }
  0x10   :  { %17 = vsyncpa [#allocation5 + $0x1], 0  ;;  %s680_s20 = smov 0   ;;  %s682_s21 = smov 0  }
  0x11   :  { %s684_s0 = smov 0   ;;  %s686_s22 = smov 0  }
  0x12 LB: > { %s696_s23 = sadd.s32 4294967295, %s646_s22   ;;  %s698_s24 = sadd.s32 1, %s646_s22   ;;  %s646_s22 = sphi %s686_s22, %s844_s22   ;;  %s642_s0 = sphi %s684_s0, %s843_s0   ;;  %s638_s21 = sphi %s682_s21, %s842_s21   ;;  %s634_s20 = sphi %s680_s20, %s841_s20  }
  0x13   : > { %s53_s25 = sld [smem:[#allocation3 + %s646_s22]]  ;;  %p65_p5 = scmp.ne.s32.totalorder %s642_s0, %s638_s21 }
  0x14   : > { %s54_s26 = sld [smem:[#allocation3 + %s698_s24]]  ;;  %p66_p6 = scmp.eq.s32.totalorder %s646_s22, 0 }
  0x15   : > { %p71_p7 = scmp.ne.s32.totalorder %s638_s21, %s634_s20  ;;  %p72_p8 = scmp.eq.s32.totalorder %s696_s23, 0 }
  0x16   : > { %s58_s27 = sadd.s32 1, %s642_s0  ;;  %p67_p9 = por %p66_p6, %p65_p5 }
  0x17   : > { %p706_p10 = por %p72_p8, %p71_p7  ;;  %s157_s29 = sand.u32 1, %s642_s0  }
  0x18   : > { %p532_p11 = scmp.lt.s32.totalorder %s646_s22, 2  ;;  %s442_s5 = sshll.u32 %s157_s29, 8 }
  0x19   : > { %s837_s28 = scalar_select %p706_p10, 1, 0 }
  0x1a   : > { %s55_s30 = ssub.s32 %s53_s25, %s54_s26  ;;  %p711_p13 = pnand %p532_p11, %p67_p9 }
  0x1b   : > { %p56_p12 = scmp.eq.s32.totalorder %s55_s30, 0  ;;  %s161_s11 = scalar_lea.vmem [#allocation4], %s442_s5 }
  0x1c   : > { %s522_s8 = scalar_select %p67_p9, [#allocation3], [#allocation6] }
  0x1d   : > { %s716_s7 = scalar_select %p56_p12, %s642_s0, %s58_s27  }
  0x1e   : > { %s523_s9 = scalar_select %p67_p9, %s646_s22, 0 }
  0x1f   : > { %s846_s8 = smov (!%p532_p11, %s522_s8), [#allocation7]  ;;  %s169_s12 = sshll.u32 %s161_s11, 4  ;;  %s718_s12 = int_to_ptr.vmem [resolvable:$true] %s169_s12 }
  0x20   : > { %s848_s9 = smov (!%p532_p11, %s523_s9), 0  ;;  %p445_p0 = scmp.ge.s32.totalorder %s646_s22, 1 }
  0x21   : > { %s162_s10 = sld [smem:[%s846_s8 + %s848_s9]]  ;;  %p185_p1 = scmp.lt.s32.totalorder %s646_s22, 3 }
  0x22   : > { %s729_s18 = scalar_lea.sflag [#allocation5], %s157_s29  ;;  %p582_p4 = pneg %p711_p13 }
  0x23   : > { %p720_p2 = pnand %p445_p0, %p185_p1  ;;  %s585_s25 = scalar_lea.hbm %s833_s2, 8192 }
  0x27   : > { %s453_s14 = sshll.u32 %s162_s10, 12 }
  0x28   : > { %s727_s17 = scalar_lea.hbm %s833_s2, %s453_s14 }
  0x29   : > { %s580_s19 = scalar_lea.hbm %s727_s17, 4096  ;;  %p586_p7 = scmp.lt.u32.totalorder %s727_s17, %s833_s2 }
  0x2a   : > { %p581_p3 = scmp.ne.s32.totalorder %s727_s17, %s580_s19  ;;  %p587_p8 = scmp.lt.u32.totalorder %s585_s25, %s580_s19 }
  0x2b   : > { %p589_p11 = scmp.lt.u32.totalorder %s580_s19, %s727_s17 }
  0x2c   : > { %p583_p5 = pnand %p582_p4, %p581_p3  ;;  %p588_p9 = por %p587_p8, %p586_p7 }
  0x2e   : > { %p584_p6 = pneg %p583_p5  ;;  %p590_p12 = por %p589_p11, %p588_p9 }
  0x30   : > { %p591_p0 = pnand %p590_p12, %p584_p6 }
  0x32   : > { %594 = shalt.err (!%p591_p0)
}
  0x33   : > { %s595_s29 = scalar_lea.vmem %s718_s12, 4096  ;;  %s649_s30 = smov [#allocation4]  }
  0x34   : > { %p596_p1 = scmp.ne.s32.totalorder %s718_s12, %s595_s29  ;;  %s600_s5 = sshll.u32 %s649_s30, 4  ;;  %s601_s5 = int_to_ptr.vmem [resolvable:$false] %s600_s5 }
  0x35   : > { %s602_s8 = scalar_lea.vmem %s601_s5, 8192  ;;  %p603_p10 = scmp.lt.s32.totalorder %s718_s12, %s601_s5 }
  0x36   : > { %p598_p3 = pnand %p596_p1, %p582_p4  ;;  %p604_p7 = scmp.lt.s32.totalorder %s602_s8, %s595_s29 }
  0x38   : > { %p599_p5 = pneg %p598_p3  ;;  %p605_p8 = por %p604_p7, %p603_p10 }
  0x3a   : > { %p606_p9 = pnand %p605_p8, %p599_p5 }
  0x3c   : > { %609 = shalt.err (!%p606_p9)
}
  0x3d   : > { %s650_s9 = smov 128   ;;  %s651_s10 = smov 8  }
  0x3e   : > { %531 = dma.hbm_to_vmem [thread:$0]  (!%p711_p13), %s727_s17, 4096, %s718_s12, %s729_s18, %s650_s9, %s650_s9, %s651_s10  }
  0x3f   : > { %189 = sbr.rel (%p720_p2) target bundleno = 324 (0x144), region = 32  ;;  %s191_s11 = sand.u32 (!%p720_p2), 1, %s638_s21  }
  0x40   : > { %s446_s14 = sshll.u32 (!%p720_p2), %s191_s11, 8  ;;  %s192_s15 = scalar_lea.sflag (!%p720_p2), [#allocation5], %s191_s11 }
  0x41   : > { %s760_s16 = scalar_lea.vmem (!%p720_p2), [#allocation4], %s446_s14  ;;  %p840_p10 = scmp.ne.s32.totalorder (!%p720_p2), %s837_s28, 0 }
  0x46   : > { %629 = dma.done.wait (%p840_p10), %s192_s15, 4096  }
  0x47   : > { %631 = vsyncadd (%p840_p10), %s192_s15, 4294963200  ;;  %p226_p13 = scmp.lt.s32.totalorder %s696_s23, 1  ;;  %v259_v0 = vld [vmem:[%s760_s16 + $0x80] sm:$0xff]  ;;  %v260_v1 = vld [vmem:[%s760_s16 + $0x88] sm:$0xff]  ;;  %s232_s18 = sld [smem:[#allocation3 + %s696_s23]] }
  0x48   : > { %v243_v2 = vld [vmem:[%s760_s16] sm:$0xff]  ;;  %v490_v3 = vpack.c.bf16 %v260_v1, %v259_v0  ;;  %v244_v4 = vld [vmem:[%s760_s16 + $0x8] sm:$0xff]  ;;  %v261_v5 = vld [vmem:[%s760_s16 + $0x90] sm:$0xff] }
  0x49   : > { %s771_s6 = scalar_select %p226_p13, %s696_s23, 1  ;;  %v262_v6 = vld [vmem:[%s760_s16 + $0x98] sm:$0xff]  ;;  %v492_v7 = vpack.c.bf16 %v244_v4, %v243_v2  ;;  %v245_v9 = vld [vmem:[%s760_s16 + $0x10] sm:$0xff]  ;;  %v263_v11 = vld [vmem:[%s760_s16 + $0xa0] sm:$0xff] }
  0x4a   : > { %v494_v8 = vpack.c.bf16 %v262_v6, %v261_v5  ;;  %v246_v10 = vld [vmem:[%s760_s16 + $0x18] sm:$0xff]  ;;  %491 = vmatprep.subr.bf16.mxu0 %v490_v3  ;;  %v264_v12 = vld [vmem:[%s760_s16 + $0xa8] sm:$0xff]  ;;  %v247_v15 = vld [vmem:[%s760_s16 + $0x20] sm:$0xff] }
  0x4b   : > { %493 = vmatpush3.bf16.msra.mxu0 %v492_v7  ;;  %v496_v13 = vpack.c.bf16 %v246_v10, %v245_v9  ;;  %s454_s28 = sshll.u32 %s771_s6, 4  ;;  %v498_v14 = vpack.c.bf16 %v264_v12, %v263_v11  ;;  %v248_v16 = vld [vmem:[%s760_s16 + $0x28] sm:$0xff]  ;;  %v265_v17 = vld [vmem:[%s760_s16 + $0xb0] sm:$0xff]  ;;  %v266_v18 = vld [vmem:[%s760_s16 + $0xb8] sm:$0xff]  ;;  %s449_s25 = sshll.u32 %s771_s6, 3 }
  0x4c   : > { %495 = vmatprep.subr.bf16.mxu0 %v494_v8  ;;  %s788_s17 = scalar_lea.vmem %s832_s1, %s454_s28  ;;  %v500_v19 = vpack.c.bf16 %v248_v16, %v247_v15  ;;  %v502_v20 = vpack.c.bf16 %v266_v18, %v265_v17  ;;  %v249_v21 = vld [vmem:[%s760_s16 + $0x30] sm:$0xff]  ;;  %v250_v22 = vld [vmem:[%s760_s16 + $0x38] sm:$0xff]  ;;  %v267_v23 = vld [vmem:[%s760_s16 + $0xc0] sm:$0xff]  ;;  %s240_s29 = scalar_lea.vmem %s835_s4, %s449_s25 }
  0x4d   : > { %v268_v24 = vld [vmem:[%s760_s16 + $0xc8] sm:$0xff]  ;;  %v504_v26 = vpack.c.bf16 %v250_v22, %v249_v21  ;;  %v251_v28 = vld [vmem:[%s760_s16 + $0x40] sm:$0xff]  ;;  %v269_v30 = vld [vmem:[%s760_s16 + $0xd0] sm:$0xff]  ;;  %p233_p2 = scmp.lt.s32.totalorder %s232_s18, 1 }
  0x4e   : > { %v242_v25 = vld [vmem:[%s788_s17 + $0x8] sm:$0xff]  ;;  %v506_v27 = vpack.c.bf16 %v268_v24, %v267_v23  ;;  %v270_v31 = vld [vmem:[%s760_s16 + $0xd8] sm:$0xff]  ;;  %v253_v34 = vld [vmem:[%s760_s16 + $0x50] sm:$0xff] }
  0x4f   : > { %497 = vmatpush3.bf16.msra.mxu0 %v496_v13  ;;  %346 = vmatprep.mubr.f32.mxu0 %v242_v25  ;;  %v252_v29 = vld [vmem:[%s760_s16 + $0x48] sm:$0xff]  ;;  %v510_v33 = vpack.c.bf16 %v270_v31, %v269_v30  ;;  %v254_v35 = vld [vmem:[%s760_s16 + $0x58] sm:$0xff]  ;;  %v271_v36 = vld [vmem:[%s760_s16 + $0xe0] sm:$0xff]  ;;  %s850_s18 = smov (!%p233_p2, %s232_s18), 1 }
  0x50   : > { %499 = vmatprep.subr.bf16.mxu0 %v498_v14  ;;  %v508_v32 = vpack.c.bf16 %v252_v29, %v251_v28  ;;  %v272_v37 = vld [vmem:[%s760_s16 + $0xe8] sm:$0xff]  ;;  %v512_v38 = vpack.c.bf16 %v254_v35, %v253_v34  ;;  %v255_v40 = vld [vmem:[%s760_s16 + $0x60] sm:$0xff]  ;;  %v273_v42 = vld [vmem:[%s760_s16 + $0xf0] sm:$0xff]  ;;  %s235_s22 = scalar_lea.vmem %s834_s3, %s850_s18 }
  0x51   : > { %v514_v39 = vpack.c.bf16 %v272_v37, %v271_v36  ;;  %v256_v41 = vld [vmem:[%s760_s16 + $0x68] sm:$0xff]  ;;  %v274_v43 = vld [vmem:[%s760_s16 + $0xf8] sm:$0xff]  ;;  %v257_v46 = vld [vmem:[%s760_s16 + $0x70] sm:$0xff] }
  0x52   : > { %v516_v44 = vpack.c.bf16 %v256_v41, %v255_v40  ;;  %v518_v45 = vpack.c.bf16 %v274_v43, %v273_v42  ;;  %v258_v47 = vld [vmem:[%s760_s16 + $0x78] sm:$0xff]  ;;  %v241_v49 = vld [vmem:[%s788_s17] sm:$0xff] }
  0x53   : > { %501 = vmatpush3.bf16.msra.mxu0 %v500_v19  ;;  %v520_v48 = vpack.c.bf16 %v258_v47, %v257_v46  ;;  %v450_v51 = vld [vmem:[%s235_s22] ss:$0 sm:$0xff] }
  0x54   : > { %503 = vmatprep.subr.bf16.mxu0 %v502_v20 }
  0x57   : > { %505 = vmatpush3.bf16.msra.mxu0 %v504_v26 }
  0x58   : > { %507 = vmatprep.subr.bf16.mxu0 %v506_v27 }
  0x5b   : > { %509 = vmatpush3.bf16.msra.mxu0 %v508_v32 }
  0x5c   : > { %511 = vmatprep.subr.bf16.mxu0 %v510_v33 }
  0x5f   : > { %513 = vmatpush3.bf16.msra.mxu0 %v512_v38 }
  0x60   : > { %515 = vmatprep.subr.bf16.mxu0 %v514_v39 }
  0x63   : > { %517 = vmatpush3.bf16.msra.mxu0 %v516_v44 }
  0x64   : > { %519 = vmatprep.subr.bf16.mxu0 %v518_v45 }
  0x67   : > { %521 = vmatpush3.bf16.msra.mxu0 %v520_v48 }
  0x6a   : > { %347 = vmatmul.mubr.f32.vlgmr.msra.gmra.mrb[0].mxu0 %v241_v49 }
 0x13d   : > { %v487_v50 = vpop.f32.mrb[0].mxu0 }
 0x13e   : > { %v488_v52 = vpop.f32.mrb[1].mxu0 }
 0x13f   : > { %v489_v53 = vadd.f32 %v488_v52, %v487_v50 }
 0x141   : > { %v349_v54 = vadd.f32 %v489_v53, %v450_v51 }
 0x143   : > { %352 = vst [vmem:[%s240_s29] sm:$0xff] %v349_v54 }
 0x144 PF: > { %p20_p4 = scmp.ge.s32.totalorder %s698_s24, 4   ;;  %s841_s20 = smov %s638_s21 }
 0x145   : > { %s842_s21 = smov %s642_s0  ;;  %s843_s0 = smov %s716_s7 }
 0x146   : > { %s844_s22 = smov %s698_s24  ;;  %22 = sbr.rel (!%p20_p4) target bundleno = 18 (0x12), region = 78 }
 0x14d   :  { %372 = vsyncpa [#allocation5], 1 }
 0x14e   :  { %374 = vsyncpa [#allocation5 + $0x1], 1 }

</bundles_post_ra>
